<compile_context>
chip_gen: v7x
topology: tpu7x:2x2x1
jax: 0.10.0
libtpu: 0.0.40
codegen_flags: <defaults>
</compile_context>

<pallas_src>
import functools

import jax
import jax.numpy as jnp
from jax.experimental import pallas as pl
from jax.experimental.pallas import tpu as pltpu


def _rope_cache_kernel(inv_freq_ref, cos_ref, sin_ref):
    """Compute one (dim, tile_seq) block of the rotary cos/sin cache.

    inv_freq_ref: (half, 1) f32, resident across grid steps (constant index_map).
    cos_ref / sin_ref: (dim, tile_seq) f32 output tiles, dim == 2*half,
                       tile_seq a multiple of 128 (lane-dense stores).
    """
    i = pl.program_id(0)
    half = inv_freq_ref.shape[0]
    tile_seq = cos_ref.shape[-1]

    # Positions for this tile along the lane axis.  Built in int32 then cast;
    # exact up to 2^24 positions in f32 (plenty for realistic seq_len).
    t = (jax.lax.broadcasted_iota(jnp.int32, (1, tile_seq), 1)
         + i * tile_seq).astype(jnp.float32)

    # outer(inv_freq, t): (half, 1) * (1, tile_seq) -> (half, tile_seq)  (VPU)
    freqs = inv_freq_ref[...] * t

    # Half-width transcendentals only (EUP); duplicate at the store since
    # emb = concat([freqs, freqs], -1) makes both halves identical.
    c = jnp.cos(freqs)
    s = jnp.sin(freqs)
    cos_ref[:half, :] = c
    cos_ref[half:, :] = c
    sin_ref[:half, :] = s
    sin_ref[half:, :] = s


@functools.partial(jax.jit, static_argnames=("seq_len", "dim", "tile_seq"))
def _build_cos_sin_cache(inv_freq, seq_len, dim, tile_seq=2048):
    """Pallas-computed cos/sin caches of shape (seq_len, dim), float32."""
    half = dim // 2

    # seq lives on the lane axis -> tiles must be multiples of 128.
    padded_min = ((seq_len + 127) // 128) * 128
    tile = min(tile_seq, padded_min)                 # both multiples of 128
    padded = ((seq_len + tile - 1) // tile) * tile
    grid = (padded // tile,)

    inv_freq_2d = inv_freq.reshape(half, 1).astype(jnp.float32)

    cos_t, sin_t = pl.pallas_call(
        _rope_cache_kernel,
        out_shape=(
            jax.ShapeDtypeStruct((dim, padded), jnp.float32),
            jax.ShapeDtypeStruct((dim, padded), jnp.float32),
        ),
        grid_spec=pltpu.PrefetchScalarGridSpec(
            num_scalar_prefetch=0,
            grid=grid,
            in_specs=[pl.BlockSpec((half, 1), lambda i: (0, 0))],
            out_specs=[
                pl.BlockSpec((dim, tile), lambda i: (0, i)),
                pl.BlockSpec((dim, tile), lambda i: (0, i)),
            ],
        ),
        compiler_params=pltpu.CompilerParams(
            dimension_semantics=("parallel",)),   # megacore split on v7x
    )(inv_freq_2d)

    # Layout plumbing back to the (seq, dim) buffers the module exposes.
    cos = cos_t[:, :seq_len].T
    sin = sin_t[:, :seq_len].T
    return cos, sin


class TimeMoeRotaryEmbedding:
    """JAX/Pallas port of hf_ltm TimeMoeRotaryEmbedding."""

    def __init__(self, dim, max_position_embeddings=10000, base=10000):
        self.dim = dim
        self.max_position_embeddings = max_position_embeddings
        self.base = base
        # inv_freq = 1 / base^(arange(0, dim, 2)/dim)
        self.inv_freq = 1.0 / (
            self.base ** (jnp.arange(0, self.dim, 2, dtype=jnp.float32) / self.dim)
        )
        self._set_cos_sin_cache(seq_len=max_position_embeddings)

    def _set_cos_sin_cache(self, seq_len):
        self.max_seq_len_cached = seq_len
        # Cache kept in float32 (matches torch default dtype); cast to x.dtype
        # at call time, exactly like the reference forward.
        self.cos_cached, self.sin_cached = _build_cos_sin_cache(
            self.inv_freq, seq_len, self.dim)

    def __call__(self, x, seq_len=None):
        if seq_len is None:
            seq_len = self.max_seq_len_cached
        if seq_len > self.max_seq_len_cached:
            self._set_cos_sin_cache(seq_len=seq_len)
        return (
            self.cos_cached[:seq_len].astype(x.dtype),
            self.sin_cached[:seq_len].astype(x.dtype),
        )


def _ref_cos_sin(inv_freq, seq_len, dim):
    """Plain-JAX reference matching the PyTorch buffer math."""
    t = jnp.arange(seq_len, dtype=jnp.float32)
    freqs = jnp.outer(t, inv_freq)
    emb = jnp.concatenate([freqs, freqs], axis=-1)
    return jnp.cos(emb), jnp.sin(emb)


if __name__ == "__main__":
    key = jax.random.PRNGKey(0)
    batch, num_heads, seq, head_dim = 2, 2, 8, 32
    # x is only used for its dtype in the reference forward
    x = jax.random.normal(key, (batch, num_heads, seq, head_dim), dtype=jnp.float32)

    rope = TimeMoeRotaryEmbedding(dim=head_dim, max_position_embeddings=128)
    cos, sin = rope(x, seq_len=seq)
    cos = jax.block_until_ready(cos)
    sin = jax.block_until_ready(sin)

    ref_cos, ref_sin = _ref_cos_sin(rope.inv_freq, seq, head_dim)
    assert cos.shape == (seq, head_dim) and sin.shape == (seq, head_dim)
    assert cos.dtype == x.dtype and sin.dtype == x.dtype
    assert jnp.allclose(cos, ref_cos, atol=1e-5)
    assert jnp.allclose(sin, ref_sin, atol=1e-5)

    # Exercise the cache-extension path (seq_len > max cached) as well.
    cos2, sin2 = rope(x, seq_len=300)
    cos2 = jax.block_until_ready(cos2)
    sin2 = jax.block_until_ready(sin2)
    ref_cos2, ref_sin2 = _ref_cos_sin(rope.inv_freq, 300, head_dim)
    assert cos2.shape == (300, head_dim)
    assert jnp.allclose(cos2, ref_cos2, atol=1e-5)
    assert jnp.allclose(sin2, ref_sin2, atol=1e-5)

    print("KERNEL_OK")
</pallas_src>

<mosaic_0001>
module attributes {stable_mosaic.version = 11 : i64} {
  func.func @_rope_cache_kernel(%arg0: i32, %arg1: memref<16x1xf32, #tpu.memory_space<vmem>>, %arg2: memref<32x128xf32, #tpu.memory_space<vmem>>, %arg3: memref<32x128xf32, #tpu.memory_space<vmem>>) attributes {dimension_semantics = [#tpu.dimension_semantics<parallel>], iteration_bounds = array<i64: 1>, scalar_prefetch = 0 : i64, scratch_operands = 0 : i64, tpu.core_type = #tpu.core_type<tc>, window_params = [{pipeline_mode = #tpu.pipeline_mode<synchronous>, transform_indices = @transform_0, window_bounds = array<i64: 16, 1>}, {transform_indices = @transform_1, window_bounds = array<i64: 32, 128>}, {transform_indices = @transform_2, window_bounds = array<i64: 32, 128>}]} {
    %0 = tpu.iota {dimensions = array<i32: 1>} : vector<1x128xi32>
    %c128_i32 = arith.constant 128 : i32
    %1 = arith.muli %arg0, %c128_i32 : i32
    %2 = vector.broadcast %1 : i32 to vector<1x128xi32>
    %3 = arith.addi %0, %2 : vector<1x128xi32>
    %4 = arith.sitofp %3 : vector<1x128xi32> to vector<1x128xf32>
    %c0 = arith.constant 0 : index
    %c0_0 = arith.constant 0 : index
    %5 = vector.load %arg1[%c0, %c0_0] : memref<16x1xf32, #tpu.memory_space<vmem>>, vector<16x1xf32>
    %6 = vector.broadcast %5 : vector<16x1xf32> to vector<16x128xf32>
    %7 = vector.broadcast %4 : vector<1x128xf32> to vector<16x128xf32>
    %8 = arith.mulf %6, %7 : vector<16x128xf32>
    %9 = math.cos %8 : vector<16x128xf32>
    %10 = math.sin %8 : vector<16x128xf32>
    %c0_1 = arith.constant 0 : index
    %c0_2 = arith.constant 0 : index
    %11 = vector.load %arg2[%c0_1, %c0_2] : memref<32x128xf32, #tpu.memory_space<vmem>>, vector<16x128xf32>
    tpu.vector_store %arg2[%c0_1, %c0_2], %9 {strides = array<i32>} : memref<32x128xf32, #tpu.memory_space<vmem>>, vector<16x128xf32>,
    %c16 = arith.constant 16 : index
    %c0_3 = arith.constant 0 : index
    %12 = vector.load %arg2[%c16, %c0_3] : memref<32x128xf32, #tpu.memory_space<vmem>>, vector<16x128xf32>
    tpu.vector_store %arg2[%c16, %c0_3], %9 {strides = array<i32>} : memref<32x128xf32, #tpu.memory_space<vmem>>, vector<16x128xf32>,
    %c0_4 = arith.constant 0 : index
    %c0_5 = arith.constant 0 : index
    %13 = vector.load %arg3[%c0_4, %c0_5] : memref<32x128xf32, #tpu.memory_space<vmem>>, vector<16x128xf32>
    tpu.vector_store %arg3[%c0_4, %c0_5], %10 {strides = array<i32>} : memref<32x128xf32, #tpu.memory_space<vmem>>, vector<16x128xf32>,
    %c16_6 = arith.constant 16 : index
    %c0_7 = arith.constant 0 : index
    %14 = vector.load %arg3[%c16_6, %c0_7] : memref<32x128xf32, #tpu.memory_space<vmem>>, vector<16x128xf32>
    tpu.vector_store %arg3[%c16_6, %c0_7], %10 {strides = array<i32>} : memref<32x128xf32, #tpu.memory_space<vmem>>, vector<16x128xf32>,
    return
  }
  func.func @transform_0(%arg0: i32) -> (i32, i32) {
    %c0_i32 = arith.constant 0 : i32
    %c0_i32_0 = arith.constant 0 : i32
    %c0_i32_1 = arith.constant 0 : i32
    return %c0_i32, %c0_i32_0 : i32, i32
  }
  func.func @transform_1(%arg0: i32) -> (i32, i32) {
    %c0_i32 = arith.constant 0 : i32
    %c0_i32_0 = arith.constant 0 : i32
    return %c0_i32, %arg0 : i32, i32
  }
  func.func @transform_2(%arg0: i32) -> (i32, i32) {
    %c0_i32 = arith.constant 0 : i32
    %c0_i32_0 = arith.constant 0 : i32
    return %c0_i32, %arg0 : i32, i32
  }
}

</mosaic_0001>

<bundles_post_ra>
// kernel: _build_cos_sin_cache.1
= control target key start
LH: loop header
LB: loop body
LE: loop exit
PB: predicated region body
PF: predicated region fallthrough
CT: control target
= control target key end

     0   :  { %8 = vsyncpa [#allocation3], 0  ;;  %v578_v1 = vmov 0   ;;  %s701_s0 = inlined_call_operand.vmem [shape: f32[16,1], index: 0, kind: input, shape index: {}]   ;;  %s702_s1 = inlined_call_operand.hbm [shape: f32[32,128], index: 1, kind: output, shape index: {0}]   ;;  %s703_s2 = inlined_call_operand.hbm [shape: f32[32,128], index: 2, kind: output, shape index: {1}]  }
   0x1   :  { %v18_v0 = vld [vmem:[%s701_s0] sm:$0xff]  ;;  %521 = vset.pattern.permute.xlu0 %v578_v1  ;;  %v19_v2 = vld [vmem:[%s701_s0 + $0x8] sm:$0xff] }
   0x2   :  { %22 = vperm.xlu0 %521, %v18_v0  }
   0x3   :  { %9 = vsyncpa [#allocation5], 0  ;;  %v12_v3 = vlaneseq  ;;  %v579_v26 = vmov 683565275   ;;  %v580_v30 = vmov 2475754826  }
   0x4   :  { %v581_v32 = vmov 2131351028   ;;  %v582_v34 = vmov 2102212464   ;;  %v583_v36 = vmov 920167782  }
   0x5   :  { %v13_v4 = vand.u32 127, %v12_v3  ;;  %v584_v43 = vmov 1326507024   ;;  %s585_s0 = smov [#allocation2]   ;;  %s586_s14 = smov [#allocation4]  }
   0x6   :  { %27 = vperm.xlu0 %521, %v19_v2   ;;  %s459_s13 = sshll.u32 %s585_s0, 4  ;;  %s471_s15 = sshll.u32 %s586_s14, 4  ;;  %s460_s13 = int_to_ptr.vmem [resolvable:$true] %s459_s13  ;;  %s670_s15 = int_to_ptr.vmem [resolvable:$true] %s471_s15 }
   0x7   :  { %v17_v5 = vcvt.s32.f32 %v13_v4  ;;  %s530_s16 = scalar_lea.vmem %s460_s13, 512  ;;  %p535_p1 = scmp.lt.s32.totalorder %s460_s13, %s460_s13 }
   0x8   :  { %p531_p0 = scmp.ne.s32.totalorder %s460_s13, %s530_s16  ;;  %p536_p2 = scmp.lt.s32.totalorder %s530_s16, %s530_s16 }
   0xa   :  { %p537_p3 = por %p536_p2, %p535_p1 }
   0xc   :  { %p538_p4 = pnand %p537_p3, %p531_p0 }
  0x81   :  { %v23_v6 = vpop.permute.xlu0 %22 }
  0x82   :  { %v610_v7 = vmul.f32 %v23_v6, %v17_v5 }
  0x84   :  { %v32_v8 = vand.u32 2147483647, %v610_v7  ;;  %v35_v9 = vand.u32 2139095040, %v610_v7  ;;  %vm34_vm14 = vcmp.lt.s32.totalorder %v610_v7, 0 }
  0x85   :  { %v28_v10 = vpop.permute.xlu0 %27 }
  0x86   :  { %v36_v11 = vshrl.u32 %v35_v9, 23  ;;  %v614_v12 = vmul.f32 %v28_v10, %v17_v5  ;;  %v39_v13 = vand.u32 8388607, %v32_v8  ;;  %vm33_vm15 = vcmp.le.f32.partialorder %v32_v8, 0.7853982 }
  0x88   :  { %v486_v14 = vadd.s32 4294967169, %v36_v11  ;;  %v138_v15 = vand.u32 2139095040, %v614_v12  ;;  %v40_v17 = vor.u32 8388608, %v39_v13  ;;  %v135_v19 = vand.u32 2147483647, %v614_v12 }
  0x8a   :  { %v42_v16 = vadd.s32 1, %v486_v14  ;;  %v139_v18 = vshrl.u32 %v138_v15, 23  ;;  %v620_v24 = vshll.u32 %v40_v17, 8  ;;  %v142_v28 = vand.u32 8388607, %v135_v19 }
  0x8c   :  { %vm43_vm0 = vcmp.gt.s32.totalorder %v42_v16, 0  ;;  %v490_v21 = vadd.s32 4294967169, %v139_v18  ;;  %v143_v58 = vor.u32 8388608, %v142_v28 }
  0x8d   :  { %v44_v20 = vsel %vm43_vm0, %v42_v16, 0  ;;  %vm137_vm0 = vcmp.lt.s32.totalorder %v614_v12, 0 }
  0x8e   :  { %v45_v22 = vshrl.u32 %v44_v20, 5  ;;  %v46_v23 = vand.u32 31, %v44_v20  ;;  %v145_v29 = vadd.s32 1, %v490_v21  ;;  %v183_v9 = vshll.u32 %v143_v58, 8 }
  0x90   :  { %v47_v25 = vsub.s32 32, %v46_v23  ;;  %v49_v27 = vshll.u32 %v579_v26, %v46_v23  ;;  %v52_v31 = vshll.u32 %v580_v30, %v46_v23  ;;  %v55_v33 = vshll.u32 %v581_v32, %v46_v23 }
  0x91   :  { %v58_v35 = vshll.u32 %v582_v34, %v46_v23  ;;  %v61_v37 = vshll.u32 %v583_v36, %v46_v23  ;;  %vm64_vm1 = vcmp.lt.s32.totalorder %v45_v22, 1  ;;  %vm66_vm2 = vcmp.lt.s32.totalorder %v45_v22, 3 }
  0x92   :  { %v50_v38 = vshrl.u32 %v580_v30, %v47_v25  ;;  %v53_v39 = vshrl.u32 %v581_v32, %v47_v25  ;;  %v56_v40 = vshrl.u32 %v582_v34, %v47_v25  ;;  %v48_v41 = vshrl.u32 %v579_v26, %v47_v25 }
  0x93   :  { %v59_v42 = vshrl.u32 %v583_v36, %v47_v25  ;;  %v62_v44 = vshrl.u32 %v584_v43, %v47_v25  ;;  %vm146_vm3 = vcmp.gt.s32.totalorder %v145_v29, 0  ;;  %vm67_vm4 = vcmp.lt.s32.totalorder %v45_v22, 4 }
  0x94   :  { %v51_v45 = vor.u32 %v50_v38, %v49_v27  ;;  %v54_v46 = vor.u32 %v53_v39, %v52_v31  ;;  %v57_v47 = vor.u32 %v56_v40, %v55_v33  ;;  %v147_v50 = vsel %vm146_vm3, %v145_v29, 0 }
  0x95   :  { %v60_v48 = vor.u32 %v59_v42, %v58_v35  ;;  %v63_v49 = vor.u32 %v62_v44, %v61_v37  ;;  %vm65_vm5 = vcmp.lt.s32.totalorder %v45_v22, 2  ;;  %v149_v61 = vand.u32 31, %v147_v50 }
  0x96   :  { %v68_v51 = vsel %vm64_vm1, %v48_v41, %v51_v45  ;;  %v69_v52 = vsel %vm67_vm4, %v57_v47, 2102212464  ;;  %v72_v53 = vsel %vm64_vm1, %v51_v45, %v54_v46  ;;  %v76_v54 = vsel %vm64_vm1, %v54_v46, %v57_v47 }
  0x97   :  { %v70_v55 = vsel %vm66_vm2, %v54_v46, %v69_v52  ;;  %v73_v56 = vsel %vm67_vm4, %v60_v48, 920167782  ;;  %v77_v57 = vsel %vm67_vm4, %v63_v49, 1326507024  ;;  %v148_v5 = vshrl.u32 %v147_v50, 5 }
  0x98   :  { %v74_v59 = vsel %vm66_vm2, %v57_v47, %v73_v56  ;;  %v78_v60 = vsel %vm66_vm2, %v60_v48, %v77_v57  ;;  %v71_v62 = vsel %vm65_vm5, %v68_v51, %v70_v55  ;;  %v150_v6 = vsub.s32 32, %v149_v61 }
  0x99   :  { %v75_v63 = vsel %vm65_vm5, %v72_v53, %v74_v59  ;;  %v79_v0 = vsel %vm65_vm5, %v76_v54, %v78_v60  ;;  %v87_v10 = vmul.u32 %v620_v24, %v71_v62  ;;  %v152_v11 = vshll.u32 %v579_v26, %v149_v61 }
  0x9a   :  { %v633_v1 = vmul.u32.u64.low %v620_v24, %v79_v0  ;;  %v634_v2 = vmul.u32.u64.high %v620_v24, %v79_v0, %v633_v1  ;;  %v637_v3 = vmul.u32.u64.low %v620_v24, %v75_v63  ;;  %v638_v4 = vmul.u32.u64.high %v620_v24, %v75_v63, %v637_v3 }
  0x9b   :  { %v155_v13 = vshll.u32 %v580_v30, %v149_v61  ;;  %v158_v14 = vshll.u32 %v581_v32, %v149_v61  ;;  %v153_v15 = vshrl.u32 %v580_v30, %v150_v6  ;;  %v156_v16 = vshrl.u32 %v581_v32, %v150_v6 }
  0x9c   :  { %v159_v17 = vshrl.u32 %v582_v34, %v150_v6  ;;  %v161_v18 = vshll.u32 %v582_v34, %v149_v61  ;;  %vm89_vm6 = vc.u32 %v634_v2, %v637_v3  ;;  %v90_v20 = vadd.s32 1, %v638_v4 }
  0x9d   :  { %v162_v21 = vshrl.u32 %v583_v36, %v150_v6  ;;  %v164_v22 = vshll.u32 %v583_v36, %v149_v61  ;;  %v154_v23 = vor.u32 %v153_v15, %v152_v11  ;;  %v157_v25 = vor.u32 %v156_v16, %v155_v13 }
  0x9e   :  { %v160_v27 = vor.u32 %v159_v17, %v158_v14  ;;  %v165_v28 = vshrl.u32 %v584_v43, %v150_v6  ;;  %v91_v24 = vsel %vm89_vm6, %v90_v20, %v638_v4  ;;  %vm167_vm7 = vcmp.lt.s32.totalorder %v148_v5, 1 }
  0x9f   :  { %v163_v29 = vor.u32 %v162_v21, %v161_v18  ;;  %vm170_vm8 = vcmp.lt.s32.totalorder %v148_v5, 4  ;;  %v92_v30 = vadd.s32 %v91_v24, %v87_v10  ;;  %vm169_vm9 = vcmp.lt.s32.totalorder %v148_v5, 3 }
  0xa0   :  { %v166_v31 = vor.u32 %v165_v28, %v164_v22  ;;  %v172_v32 = vsel %vm170_vm8, %v160_v27, 2102212464  ;;  %v151_v33 = vshrl.u32 %v579_v26, %v150_v6  ;;  %v175_v34 = vsel %vm167_vm7, %v154_v23, %v157_v25 }
  0xa1   :  { %v176_v35 = vsel %vm170_vm8, %v163_v29, 920167782  ;;  %v179_v37 = vsel %vm167_vm7, %v157_v25, %v160_v27  ;;  %v93_v38 = vadd.s32 536870912, %v92_v30  ;;  %vm168_vm10 = vcmp.lt.s32.totalorder %v148_v5, 2 }
  0xa2   :  { %v177_v36 = vsel %vm169_vm9, %v160_v27, %v176_v35  ;;  %v180_v39 = vsel %vm170_vm8, %v166_v31, 1326507024  ;;  %v171_v40 = vsel %vm167_vm7, %v151_v33, %v154_v23  ;;  %v173_v41 = vsel %vm169_vm9, %v157_v25, %v172_v32 }
  0xa3   :  { %v178_v42 = vsel %vm168_vm10, %v175_v34, %v177_v36  ;;  %v181_v43 = vsel %vm169_vm9, %v163_v29, %v180_v39  ;;  %v94_v44 = vshrl.u32 %v93_v38, 30  ;;  %v174_v50 = vsel %vm168_vm10, %v171_v40, %v173_v41 }
  0xa4   :  { %v182_v45 = vsel %vm168_vm10, %v179_v37, %v181_v43  ;;  %v648_v46 = vmul.u32.u64.low %v183_v9, %v178_v42  ;;  %v649_v47 = vmul.u32.u64.high %v183_v9, %v178_v42, %v648_v46  ;;  %v190_v53 = vmul.u32 %v183_v9, %v174_v50 }
  0xa5   :  { %v651_v48 = vmul.u32.u64.low %v183_v9, %v182_v45  ;;  %v652_v49 = vmul.u32.u64.high %v183_v9, %v182_v45, %v651_v48  ;;  %v95_v26 = vshll.u32 %v94_v44, 30  ;;  %v88_v1 = vadd.s32 %v637_v3, %v634_v2 }
  0xa6   :  { %v193_v52 = vadd.s32 1, %v649_v47  ;;  %v118_v23 = vsub.s32 4, %v94_v44  ;;  %vm136_vm1 = vcmp.le.f32.partialorder %v135_v19, 0.7853982  ;;  %vm124_vm8 = vweird.f32 %v610_v7 }
  0xa7   :  { %v96_v51 = vsub.s32 %v92_v30, %v95_v26  ;;  %vm192_vm11 = vc.u32 %v652_v49, %v648_v46  ;;  %v191_v2 = vadd.s32 %v648_v46, %v652_v49 }
  0xa8   :  { %v194_v55 = vsel %vm192_vm11, %v193_v52, %v649_v47  ;;  %v119_v32 = vsel %vm34_vm14, %v118_v23, %v94_v44 }
  0xa9   :  { %v98_v54 = vsub.s32 0, %v96_v51  ;;  %v195_v56 = vadd.s32 %v194_v55, %v190_v53  ;;  %v121_v37 = vsel %vm33_vm15, 0, %v119_v32 }
  0xaa   :  { %v331_v40 = vadd.s32 3, %v121_v37  ;;  %v125_v43 = vand.u32 3, %v121_v37 }
  0xab   :  { %v487_v57 = vmin.u32 %v98_v54, %v96_v51  ;;  %v196_v58 = vadd.s32 536870912, %v195_v56 }
  0xac   :  { %v332_v46 = vand.u32 3, %v331_v40  ;;  %vm130_vm2 = vcmp.eq.s32.totalorder %v125_v43, 2  ;;  %vm127_vm5 = vcmp.eq.s32.totalorder %v125_v43, 0  ;;  %vm126_vm7 = vcmp.lt.s32.totalorder %v125_v43, 2 }
  0xad   :  { %v100_v59 = vclz %v487_v57  ;;  %v197_v60 = vshrl.u32 %v196_v58, 30 }
  0xae   :  { %vm337_vm3 = vcmp.eq.s32.totalorder %v332_v46, 2  ;;  %vm334_vm4 = vcmp.eq.s32.totalorder %v332_v46, 0  ;;  %vm333_vm6 = vcmp.lt.s32.totalorder %v332_v46, 2 }
  0xaf   :  { %v488_v61 = vadd.s32 4294967294, %v100_v59  ;;  %v198_v62 = vshll.u32 %v197_v60, 30  ;;  %v221_v42 = vsub.s32 4, %v197_v60 }
  0xb1   :  { %vm489_vm12 = vcmp.lt.s32.totalorder %v488_v61, 0  ;;  %v199_v0 = vsub.s32 %v195_v56, %v198_v62  ;;  %v222_v44 = vsel %vm137_vm0, %v221_v42, %v197_v60 }
  0xb2   :  { %v103_v63 = vsel %vm489_vm12, 0, %v488_v61 }
  0xb3   :  { %v104_v4 = vsub.s32 32, %v103_v63  ;;  %v108_v5 = vsub.s32 4294967266, %v103_v63  ;;  %v201_v6 = vsub.s32 0, %v199_v0  ;;  %v105_v9 = vshll.u32 %v96_v51, %v103_v63 }
  0xb4   :  { %v224_v51 = vsel %vm136_vm1, 0, %v222_v44 }
  0xb5   :  { %v106_v10 = vshrl.u32 %v88_v1, %v104_v4  ;;  %v109_v11 = vadd.s32 127, %v108_v5  ;;  %v491_v13 = vmin.u32 %v201_v6, %v199_v0  ;;  %v435_v56 = vadd.s32 3, %v224_v51 }
  0xb6   :  { %v228_v60 = vand.u32 3, %v224_v51 }
  0xb7   :  { %v107_v14 = vor.u32 %v106_v10, %v105_v9  ;;  %v110_v15 = vshll.u32 %v109_v11, 23  ;;  %v203_v16 = vclz %v491_v13  ;;  %v436_v61 = vand.u32 3, %v435_v56 }
  0xb8   :  { %vm233_vm10 = vcmp.eq.s32.totalorder %v228_v60, 2  ;;  %vm230_vm12 = vcmp.eq.s32.totalorder %v228_v60, 0 }
  0xb9   :  { %v111_v17 = vor.u32 4788187, %v110_v15  ;;  %v492_v18 = vadd.s32 4294967294, %v203_v16  ;;  %v114_v21 = vcvt.s32.f32 %v107_v14  ;;  %vm441_vm9 = vcmp.eq.s32.totalorder %v436_v61, 2 }
  0xba   :  { %vm438_vm11 = vcmp.eq.s32.totalorder %v436_v61, 0 }
  0xbb   :  { %v112_v20 = vand.u32 2147483647, %v111_v17  ;;  %vm493_vm13 = vcmp.lt.s32.totalorder %v492_v18, 0 }
  0xbc   :  { %v206_v25 = vsel %vm493_vm13, 0, %v492_v18  ;;  %vm437_vm13 = vcmp.lt.s32.totalorder %v436_v61, 2 }
  0xbd   :  { %v115_v22 = vmul.f32 %v114_v21, %v112_v20  ;;  %v207_v3 = vsub.s32 32, %v206_v25  ;;  %v211_v27 = vsub.s32 4294967266, %v206_v25  ;;  %v208_v24 = vshll.u32 %v199_v0, %v206_v25 }
  0xbf   :  { %v116_v28 = vxor.u32 2147483648, %v115_v22  ;;  %v209_v29 = vshrl.u32 %v191_v2, %v207_v3  ;;  %v212_v30 = vadd.s32 127, %v211_v27 }
  0xc1   :  { %v117_v31 = vsel %vm34_vm14, %v116_v28, %v115_v22  ;;  %v210_v34 = vor.u32 %v209_v29, %v208_v24  ;;  %v213_v35 = vshll.u32 %v212_v30, 23  ;;  %vm229_vm14 = vcmp.lt.s32.totalorder %v228_v60, 2 }
  0xc2   :  { %v120_v33 = vsel %vm33_vm15, %v610_v7, %v117_v31  ;;  %vm227_vm15 = vweird.f32 %v614_v12 }
  0xc3   :  { %522 = vcosq.f32 %v120_v33  ;;  %v214_v38 = vor.u32 4788187, %v213_v35  ;;  %v217_v39 = vcvt.s32.f32 %v210_v34 }
  0xc4   :  { %524 = vsinq.f32 %v120_v33 }
  0xc5   :  { %v215_v36 = vand.u32 2147483647, %v214_v38 }
  0xc7   :  { %v218_v41 = vmul.f32 %v217_v39, %v215_v36 }
  0xc9   :  { %v219_v45 = vxor.u32 2147483648, %v218_v41 }
  0xcb   :  { %v220_v8 = vsel %vm137_vm0, %v219_v45, %v218_v41 }
  0xcc   :  { %v223_v48 = vsel %vm136_vm1, %v614_v12, %v220_v8 }
  0xcd   :  { %v523_v47 = vpop.eup %522  ;;  %526 = vcosq.f32 %v223_v48 }
  0xce   :  { %v525_v49 = vpop.eup %524  ;;  %v131_v26 = vxor.u32 2147483648, %v523_v47  ;;  %528 = vsinq.f32 %v223_v48 }
  0xcf   :  { %v128_v50 = vxor.u32 2147483648, %v525_v49 }
  0xd0   :  { %v339_v52 = vsel %vm337_vm3, %v131_v26, %v525_v49  ;;  %v132_v53 = vsel %vm130_vm2, %v131_v26, %v525_v49 }
  0xd1   :  { %v336_v54 = vsel %vm334_vm4, %v523_v47, %v128_v50  ;;  %v129_v19 = vsel %vm127_vm5, %v523_v47, %v128_v50 }
  0xd2   :  { %v340_v55 = vsel %vm333_vm6, %v336_v54, %v339_v52  ;;  %v133_v57 = vsel %vm126_vm7, %v129_v19, %v132_v53 }
  0xd3   :  { %v341_v58 = vsel %vm124_vm8, nan, %v340_v55  ;;  %v134_v59 = vsel %vm124_vm8, nan, %v133_v57 }
  0xd4   :  { %450 = vst [vmem:[#allocation4] sm:$0xff] %v341_v58  ;;  %452 = vst [vmem:[#allocation4 + $0x10] sm:$0xff] %v341_v58 }
  0xd5   :  { %446 = vst [vmem:[#allocation2] sm:$0xff] %v134_v59  ;;  %448 = vst [vmem:[#allocation2 + $0x10] sm:$0xff] %v134_v59 }
  0xd7   :  { %v527_v62 = vpop.eup %526 }
  0xd8   :  { %v529_v63 = vpop.eup %528  ;;  %v234_v0 = vxor.u32 2147483648, %v527_v62 }
  0xd9   :  { %v231_v1 = vxor.u32 2147483648, %v529_v63 }
  0xda   :  { %v443_v7 = vsel %vm441_vm9, %v234_v0, %v529_v63  ;;  %v235_v4 = vsel %vm233_vm10, %v234_v0, %v529_v63 }
  0xdb   :  { %v440_v5 = vsel %vm438_vm11, %v527_v62, %v231_v1  ;;  %v232_v6 = vsel %vm230_vm12, %v527_v62, %v231_v1 }
  0xdc   :  { %v444_v9 = vsel %vm437_vm13, %v440_v5, %v443_v7  ;;  %v236_v10 = vsel %vm229_vm14, %v232_v6, %v235_v4 }
  0xdd   :  { %v445_v11 = vsel %vm227_vm15, nan, %v444_v9  ;;  %v237_v13 = vsel %vm227_vm15, nan, %v236_v10 }
  0xde   :  { %451 = vst [vmem:[#allocation4 + $0x8] sm:$0xff] %v445_v11  ;;  %453 = vst [vmem:[#allocation4 + $0x18] sm:$0xff] %v445_v11 }
  0xdf   :  { %447 = vst [vmem:[#allocation2 + $0x8] sm:$0xff] %v237_v13  ;;  %449 = vst [vmem:[#allocation2 + $0x18] sm:$0xff] %v237_v13 }
  0xe0   :  { %541 = shalt.err (!%p538_p4)
}
  0xe1   :  { %s542_s19 = scalar_lea.hbm %s702_s1, 512 }
  0xe2   :  { %p543_p5 = scmp.ne.s32.totalorder %s702_s1, %s542_s19  ;;  %p546_p6 = scmp.lt.u32.totalorder %s542_s19, %s702_s1 }
  0xe4   :  { %p548_p7 = pnand %p546_p6, %p543_p5 }
  0xe6   :  { %551 = shalt.err (!%p548_p7)
}
  0xe7   :  { %s587_s24 = smov 128   ;;  %s588_s25 = smov 8  }
  0xe8   :  { %465 = dma.vmem_to_hbm [thread:$0]  %s460_s13, 512, %s702_s1, [#allocation3], %s587_s24, %s587_s24, %s588_s25  }
  0xe9   :  { %s552_s28 = scalar_lea.vmem %s670_s15, 512  ;;  %p557_p9 = scmp.lt.s32.totalorder %s670_s15, %s670_s15 }
  0xea   :  { %p553_p8 = scmp.ne.s32.totalorder %s670_s15, %s552_s28  ;;  %p558_p10 = scmp.lt.s32.totalorder %s552_s28, %s552_s28 }
  0xec   :  { %p559_p11 = por %p558_p10, %p557_p9 }
  0xee   :  { %p560_p12 = pnand %p559_p11, %p553_p8 }
  0xf0   :  { %563 = shalt.err (!%p560_p12)
}
  0xf1   :  { %s564_s3 = scalar_lea.hbm %s703_s2, 512 }
  0xf2   :  { %p565_p13 = scmp.ne.s32.totalorder %s703_s2, %s564_s3  ;;  %p568_p0 = scmp.lt.u32.totalorder %s564_s3, %s703_s2 }
  0xf4   :  { %p570_p1 = pnand %p568_p0, %p565_p13 }
  0xf6   :  { %573 = shalt.err (!%p570_p1)
}
  0xf7   :  { %477 = dma.vmem_to_hbm [thread:$0]  %s670_s15, 512, %s703_s2, [#allocation5], %s587_s24, %s587_s24, %s588_s25  }
  0xf8   :  { %574 = dma.done.wait [#allocation3], 512  }
  0xf9   :  { %575 = vsyncadd [#allocation3], 4294966784 }
  0xfa   :  { %576 = dma.done.wait [#allocation5], 512  }
  0xfb   :  { %577 = vsyncadd [#allocation5], 4294966784 }
  0xfc   :  { %484 = vsyncpa [#allocation3], 1 }
  0xfd   :  { %485 = vsyncpa [#allocation5], 1 }

</bundles_post_ra>
